<compile_context>
chip_gen: v6e
topology: v6e:2x2x1
jax: 0.10.0
libtpu: 0.0.40
codegen_flags: <defaults>
</compile_context>

<pallas_src>
import math

import jax
import jax.numpy as jnp
from jax.experimental import pallas as pl
from jax.experimental.pallas import tpu as pltpu


def _transpose_tile_kernel(x_ref, o_ref):
    # x_ref: (tr, tc) tile of the (B, R, C) input (batch dim squeezed out).
    # o_ref: (tc, tr) tile of the (B, C, R) output.
    o_ref[...] = x_ref[...].T


def _pick_tile(n: int, target: int = 512) -> int:
    """Largest multiple of 128 that divides n and is <= target; else full n."""
    if n % 128 != 0:
        return n                      # full extent is always a legal block dim
    best = 128
    t = 128
    while t <= min(n, target):
        if n % t == 0:
            best = t
        t += 128
    return best


def _batched_transpose(x3: jax.Array) -> jax.Array:
    """(B, R, C) -> (B, C, R) with a tiled Pallas transpose kernel."""
    B, R, C = x3.shape
    tr = _pick_tile(R)                # input sublane tile == output lane tile
    tc = _pick_tile(C)                # input lane tile == output sublane tile
    grid = (B, R // tr, C // tc)

    return pl.pallas_call(
        _transpose_tile_kernel,
        out_shape=jax.ShapeDtypeStruct((B, C, R), x3.dtype),
        grid_spec=pltpu.PrefetchScalarGridSpec(
            num_scalar_prefetch=0,
            grid=grid,
            in_specs=[pl.BlockSpec((None, tr, tc), lambda b, i, j: (b, i, j))],
            out_specs=pl.BlockSpec((None, tc, tr), lambda b, i, j: (b, j, i)),
        ),
        compiler_params=pltpu.CompilerParams(
            dimension_semantics=("parallel", "parallel", "parallel"),
        ),
    )(x3)


def _grouped_swap(dims):
    """Return (a, s) if dims == (0..a-1, s..n-1, a..s-1), else None."""
    n = len(dims)
    a = 0
    while a < n and dims[a] == a:
        a += 1
    if a == n:
        return None                   # identity permutation
    s = dims[a]
    if s <= a:
        return None
    if tuple(dims[a:]) != tuple(range(s, n)) + tuple(range(a, s)):
        return None
    return a, s


def permute(x: jax.Array, dims) -> jax.Array:
    """Pallas equivalent of torch.Tensor.permute(*dims)."""
    ndim = x.ndim
    dims = tuple(int(d) % ndim for d in dims)
    assert sorted(dims) == list(range(ndim)), f"invalid permutation {dims}"

    if dims == tuple(range(ndim)):
        return x                      # identity: nothing to move

    out_shape = tuple(x.shape[d] for d in dims)
    grp = _grouped_swap(dims)
    if grp is None:
        # TODO(synk): permutations that are not an identity-prefix + swap of
        # two contiguous trailing groups (e.g. (0, 2, 1, 3)) are not a single
        # grouped 2-D transpose; fall back to XLA's transpose for those.
        return jnp.transpose(x, dims)

    a, s = grp
    B = math.prod(x.shape[:a])
    R = math.prod(x.shape[a:s])
    C = math.prod(x.shape[s:])
    x3 = x.reshape(B, R, C)           # metadata-only (x is contiguous)
    y3 = _batched_transpose(x3)       # (B, C, R) — all HBM traffic is here
    return y3.reshape(out_shape)      # metadata-only (y3 is contiguous)


if __name__ == "__main__":
    key = jax.random.PRNGKey(0)
    # Small NCHW activation, as the autoencoder would feed this module.
    x = jax.random.normal(key, (2, 8, 16, 16), dtype=jnp.float32)

    permute_fn = jax.jit(permute, static_argnums=1)

    # NCHW -> NHWC
    dims = (0, 2, 3, 1)
    y = jax.block_until_ready(permute_fn(x, dims))
    y_ref = jnp.transpose(x, dims)
    assert y.shape == y_ref.shape and y.dtype == x.dtype
    assert jnp.array_equal(y, y_ref)

    # NHWC -> NCHW (inverse permutation, exercises the other tiling path)
    z = jax.block_until_ready(permute_fn(y, (0, 3, 1, 2)))
    assert jnp.array_equal(z, x)

    print("KERNEL_OK")
</pallas_src>

<mosaic_0001>
module attributes {stable_mosaic.version = 11 : i64} {
  func.func @_transpose_tile_kernel(%arg0: i32, %arg1: i32, %arg2: i32, %arg3: memref<1x8x256xf32, #tpu.memory_space<vmem>>, %arg4: memref<1x256x8xf32, #tpu.memory_space<vmem>>) attributes {dimension_semantics = [#tpu.dimension_semantics<parallel>, #tpu.dimension_semantics<parallel>, #tpu.dimension_semantics<parallel>], iteration_bounds = array<i64: 2, 1, 1>, scalar_prefetch = 0 : i64, scratch_operands = 0 : i64, tpu.core_type = #tpu.core_type<tc>, window_params = [{transform_indices = @transform_0, window_bounds = array<i64: 1, 8, 256>}, {transform_indices = @transform_1, window_bounds = array<i64: 1, 256, 8>}]} {
    %c0 = arith.constant 0 : index
    %c0_0 = arith.constant 0 : index
    %c0_1 = arith.constant 0 : index
    %0 = vector.load %arg3[%c0, %c0_0, %c0_1] : memref<1x8x256xf32, #tpu.memory_space<vmem>>, vector<1x8x256xf32>
    %1 = vector.shape_cast %0 : vector<1x8x256xf32> to vector<8x256xf32>
    %2 = tpu.transpose %1, [1, 0] : vector<8x256xf32> -> vector<256x8xf32>
    %c0_2 = arith.constant 0 : index
    %c0_3 = arith.constant 0 : index
    %c0_4 = arith.constant 0 : index
    %3 = vector.load %arg4[%c0_2, %c0_3, %c0_4] : memref<1x256x8xf32, #tpu.memory_space<vmem>>, vector<1x256x8xf32>
    %4 = vector.shape_cast %3 : vector<1x256x8xf32> to vector<256x8xf32>
    %5 = vector.shape_cast %2 : vector<256x8xf32> to vector<1x256x8xf32>
    tpu.vector_store %arg4[%c0_2, %c0_3, %c0_4], %5 {strides = array<i32>} : memref<1x256x8xf32, #tpu.memory_space<vmem>>, vector<1x256x8xf32>,
    return
  }
  func.func @transform_0(%arg0: i32, %arg1: i32, %arg2: i32) -> (i32, i32, i32) {
    %c0_i32 = arith.constant 0 : i32
    return %arg0, %arg1, %arg2 : i32, i32, i32
  }
  func.func @transform_1(%arg0: i32, %arg1: i32, %arg2: i32) -> (i32, i32, i32) {
    %c0_i32 = arith.constant 0 : i32
    return %arg0, %arg2, %arg1 : i32, i32, i32
  }
}

</mosaic_0001>

<bundles_post_ra>
// kernel: permute.1
= control target key start
LH: loop header
LB: loop body
LE: loop exit
PB: predicated region body
PF: predicated region fallthrough
CT: control target
= control target key end

     0   :  { %s462_s6 = smov 0   ;;  %s464_s7 = smov 0   ;;  %s561_s0 = inlined_call_operand.vmem [shape: f32[2,8,256], index: 0, kind: input, shape index: {}]   ;;  %s562_s1 = inlined_call_operand.vmem [shape: f32[2,256,8], index: 1, kind: output, shape index: {}]  }
   0x1   :  { %s466_s8 = smov 0  }
   0x2 LB: > { %s30_s9 = sadd.s32 1, %s446_s7  ;;  %p394_p0 = scmp.ge.s32.totalorder %s450_s8, 1  ;;  %s450_s8 = sphi %s466_s8, %s11_s8   ;;  %s446_s7 = sphi %s464_s7, %s564_s7   ;;  %s442_s6 = sphi %s462_s6, %s563_s6  }
   0x3   : > { %p32_p1 = scmp.ge.s32.totalorder %s30_s9, 2  ;;  %p123_p2 = scmp.lt.s32.totalorder %s450_s8, 3 }
   0x5   : > { %s566_s9 = smov (%p32_p1, %s30_s9), 0  ;;  %p124_p3 = pnand %p394_p0, %p123_p2 }
   0x6   : > { %p159_p4 = scmp.lt.s32.totalorder (!%p124_p3), %s442_s6, 1 }
   0x7   : > { %127 = sbr.rel (%p124_p3) target bundleno = 266 (0x10a), region = 24 }
   0xc   : > { %s568_s6 = smov (!%p159_p4, %s442_s6), 1  ;;  %vm251_vm0 = vcmask 64512  }
   0xd   : > { %s401_s10 = sshll.u32 %s568_s6, 4  ;;  %s402_s14 = sshll.u32 %s568_s6, 8 }
   0xe   : > { %s170_s13 = scalar_lea.vmem %s561_s0, %s401_s10  ;;  %s486_s17 = scalar_lea.vmem %s562_s1, %s402_s14 }
   0xf   : > { %v185_v0 = vld [vmem:[%s170_s13] sm:$0xff]  ;;  %v186_v1 = vld [vmem:[%s170_s13 + $0x8] sm:$0xff] }
  0x10   : > { %187 = vxpose.xlu0.b32.start.end [1/1] (short) %v185_v0, 128 }
  0x4d   : > { %219 = vxpose.xlu0.b32.start.end [1/1] (short) %v186_v1, 128 }
  0x8c   : > { %v203_v2 = vpop.trf.xlu0 }
  0x8d   : > { %252 = vst.msk [vmem:[%s486_s17] sm:$0xff] %vm251_vm0, %v203_v2 }
  0x90   : > { %v204_v3 = vpop.trf.xlu0 }
  0x91   : > { %253 = vst.msk [vmem:[%s486_s17 + $0x8] sm:$0xff] %vm251_vm0, %v204_v3 }
  0x94   : > { %v205_v4 = vpop.trf.xlu0 }
  0x95   : > { %254 = vst.msk [vmem:[%s486_s17 + $0x10] sm:$0xff] %vm251_vm0, %v205_v4 }
  0x98   : > { %v206_v5 = vpop.trf.xlu0 }
  0x99   : > { %255 = vst.msk [vmem:[%s486_s17 + $0x18] sm:$0xff] %vm251_vm0, %v206_v5 }
  0x9c   : > { %v207_v6 = vpop.trf.xlu0 }
  0x9d   : > { %256 = vst.msk [vmem:[%s486_s17 + $0x20] sm:$0xff] %vm251_vm0, %v207_v6 }
  0xa0   : > { %v208_v7 = vpop.trf.xlu0 }
  0xa1   : > { %257 = vst.msk [vmem:[%s486_s17 + $0x28] sm:$0xff] %vm251_vm0, %v208_v7 }
  0xa4   : > { %v209_v8 = vpop.trf.xlu0 }
  0xa5   : > { %258 = vst.msk [vmem:[%s486_s17 + $0x30] sm:$0xff] %vm251_vm0, %v209_v8 }
  0xa8   : > { %v210_v9 = vpop.trf.xlu0 }
  0xa9   : > { %259 = vst.msk [vmem:[%s486_s17 + $0x38] sm:$0xff] %vm251_vm0, %v210_v9 }
  0xac   : > { %v211_v10 = vpop.trf.xlu0 }
  0xad   : > { %260 = vst.msk [vmem:[%s486_s17 + $0x40] sm:$0xff] %vm251_vm0, %v211_v10 }
  0xb0   : > { %v212_v11 = vpop.trf.xlu0 }
  0xb1   : > { %261 = vst.msk [vmem:[%s486_s17 + $0x48] sm:$0xff] %vm251_vm0, %v212_v11 }
  0xb4   : > { %v213_v12 = vpop.trf.xlu0 }
  0xb5   : > { %262 = vst.msk [vmem:[%s486_s17 + $0x50] sm:$0xff] %vm251_vm0, %v213_v12 }
  0xb8   : > { %v214_v13 = vpop.trf.xlu0 }
  0xb9   : > { %263 = vst.msk [vmem:[%s486_s17 + $0x58] sm:$0xff] %vm251_vm0, %v214_v13 }
  0xbc   : > { %v215_v14 = vpop.trf.xlu0 }
  0xbd   : > { %264 = vst.msk [vmem:[%s486_s17 + $0x60] sm:$0xff] %vm251_vm0, %v215_v14 }
  0xc0   : > { %v216_v15 = vpop.trf.xlu0 }
  0xc1   : > { %265 = vst.msk [vmem:[%s486_s17 + $0x68] sm:$0xff] %vm251_vm0, %v216_v15 }
  0xc4   : > { %v217_v16 = vpop.trf.xlu0 }
  0xc5   : > { %266 = vst.msk [vmem:[%s486_s17 + $0x70] sm:$0xff] %vm251_vm0, %v217_v16 }
  0xc8   : > { %v218_v17 = vpop.trf.xlu0 }
  0xc9   : > { %267 = vst.msk [vmem:[%s486_s17 + $0x78] sm:$0xff] %vm251_vm0, %v218_v17 }
  0xcc   : > { %v235_v18 = vpop.trf.xlu0 }
  0xcd   : > { %268 = vst.msk [vmem:[%s486_s17 + $0x80] sm:$0xff] %vm251_vm0, %v235_v18 }
  0xd0   : > { %v236_v19 = vpop.trf.xlu0 }
  0xd1   : > { %269 = vst.msk [vmem:[%s486_s17 + $0x88] sm:$0xff] %vm251_vm0, %v236_v19 }
  0xd4   : > { %v237_v20 = vpop.trf.xlu0 }
  0xd5   : > { %270 = vst.msk [vmem:[%s486_s17 + $0x90] sm:$0xff] %vm251_vm0, %v237_v20 }
  0xd8   : > { %v238_v21 = vpop.trf.xlu0 }
  0xd9   : > { %271 = vst.msk [vmem:[%s486_s17 + $0x98] sm:$0xff] %vm251_vm0, %v238_v21 }
  0xdc   : > { %v239_v22 = vpop.trf.xlu0 }
  0xdd   : > { %272 = vst.msk [vmem:[%s486_s17 + $0xa0] sm:$0xff] %vm251_vm0, %v239_v22 }
  0xe0   : > { %v240_v23 = vpop.trf.xlu0 }
  0xe1   : > { %273 = vst.msk [vmem:[%s486_s17 + $0xa8] sm:$0xff] %vm251_vm0, %v240_v23 }
  0xe4   : > { %v241_v24 = vpop.trf.xlu0 }
  0xe5   : > { %274 = vst.msk [vmem:[%s486_s17 + $0xb0] sm:$0xff] %vm251_vm0, %v241_v24 }
  0xe8   : > { %v242_v25 = vpop.trf.xlu0 }
  0xe9   : > { %275 = vst.msk [vmem:[%s486_s17 + $0xb8] sm:$0xff] %vm251_vm0, %v242_v25 }
  0xec   : > { %v243_v26 = vpop.trf.xlu0 }
  0xed   : > { %276 = vst.msk [vmem:[%s486_s17 + $0xc0] sm:$0xff] %vm251_vm0, %v243_v26 }
  0xf0   : > { %v244_v27 = vpop.trf.xlu0 }
  0xf1   : > { %277 = vst.msk [vmem:[%s486_s17 + $0xc8] sm:$0xff] %vm251_vm0, %v244_v27 }
  0xf4   : > { %v245_v28 = vpop.trf.xlu0 }
  0xf5   : > { %278 = vst.msk [vmem:[%s486_s17 + $0xd0] sm:$0xff] %vm251_vm0, %v245_v28 }
  0xf8   : > { %v246_v29 = vpop.trf.xlu0 }
  0xf9   : > { %279 = vst.msk [vmem:[%s486_s17 + $0xd8] sm:$0xff] %vm251_vm0, %v246_v29 }
  0xfc   : > { %v247_v30 = vpop.trf.xlu0 }
  0xfd   : > { %280 = vst.msk [vmem:[%s486_s17 + $0xe0] sm:$0xff] %vm251_vm0, %v247_v30 }
 0x100   : > { %v248_v31 = vpop.trf.xlu0 }
 0x101   : > { %281 = vst.msk [vmem:[%s486_s17 + $0xe8] sm:$0xff] %vm251_vm0, %v248_v31 }
 0x104   : > { %v249_v32 = vpop.trf.xlu0 }
 0x105   : > { %282 = vst.msk [vmem:[%s486_s17 + $0xf0] sm:$0xff] %vm251_vm0, %v249_v32 }
 0x108   : > { %v250_v33 = vpop.trf.xlu0 }
 0x109   : > { %283 = vst.msk [vmem:[%s486_s17 + $0xf8] sm:$0xff] %vm251_vm0, %v250_v33 }
 0x10a PF: > { %s11_s8 = sadd.s32 1, %s450_s8   ;;  %s563_s6 = smov %s446_s7 }
 0x10b   : > { %p8_p5 = scmp.ge.s32.totalorder %s11_s8, 4   ;;  %s564_s7 = smov %s566_s9 }
 0x10d   :  { %10 = sbr.rel (!%p8_p5) target bundleno = 2 (0x2), region = 54 }

</bundles_post_ra>
